<compile_context>
chip_gen: v7x
topology: tpu7x:2x2x1
jax: 0.10.0
libtpu: 0.0.40
codegen_flags: <defaults>
</compile_context>

<pallas_src>
import functools

import jax
import jax.numpy as jnp
import numpy as np
from jax.experimental import pallas as pl
from jax.experimental.pallas import tpu as pltpu


def _interp_matrix_np(n_in: int, n_out: int) -> np.ndarray:
    """Host-side bilinear interpolation matrix (n_out, n_in), align_corners=True."""
    if n_in == 1:
        return np.ones((n_out, 1), dtype=np.float32)
    src = np.arange(n_out, dtype=np.float64) * (n_in - 1) / (n_out - 1)
    lo = np.clip(np.floor(src).astype(np.int64), 0, n_in - 1)
    hi = np.minimum(lo + 1, n_in - 1)
    frac = (src - lo).astype(np.float32)
    a = np.zeros((n_out, n_in), dtype=np.float32)
    a[np.arange(n_out), lo] += 1.0 - frac
    a[np.arange(n_out), hi] += frac
    return a


def _unet_up_kernel(x_ref, wb_ref, at_ref, b_ref, o_ref, *, conv_first: bool):
    # x_ref:  (N*C_in,  H*W)      activations, batch folded into rows
    # wb_ref: (N*C_out, N*C_in)   block-diagonal kron(I_N, W) 1x1-conv weight
    # at_ref: (H*W,     H2*W2)    kron(Ah, Aw).T fused bilinear-interp matrix
    # b_ref:  (N*C_out, 1)        bias tiled over batch
    # o_ref:  (N*C_out, H2*W2)    lane-dense output
    x = x_ref[...]
    wb = wb_ref[...]
    at = at_ref[...]

    if conv_first:
        # Channel-mix at low resolution first (cheaper when C_out <= C_in).
        y = jnp.dot(wb, x, preferred_element_type=jnp.float32)     # (N*C_out, H*W)
        z = jnp.dot(y, at, preferred_element_type=jnp.float32)     # (N*C_out, H2*W2)
    else:
        # Upsample at C_in channels first (cheaper when C_in < C_out); final matmul
        # directly produces the lane-dense (N*C_out, H2*W2) output.
        u = jnp.dot(x, at, preferred_element_type=jnp.float32)     # (N*C_in, H2*W2)
        z = jnp.dot(wb, u, preferred_element_type=jnp.float32)     # (N*C_out, H2*W2)

    # Bias: single VPU lane-broadcast add, hidden under the MXU critical path.
    o_ref[...] = (z + b_ref[...]).astype(o_ref.dtype)


@jax.jit
def unet_bilinear_upsampling_block(x, weight, bias):
    """x: (N, C_in, H, W) f32; weight: (C_out, C_in); bias: (C_out,). Returns NCHW."""
    n, c_in, h, w = x.shape
    c_out = weight.shape[0]
    h2, w2 = 2 * h, 2 * w

    # Shape-dependent ordering: interp runs at min(C_in, C_out) channels.
    conv_first = c_out <= c_in

    # Fused bilinear-interp operator (trace-time numpy constant, exact f32):
    #   up_flat = x_flat @ kron(Ah, Aw).T
    ah = _interp_matrix_np(h, h2)                          # (H2, H)
    aw = _interp_matrix_np(w, w2)                          # (W2, W)
    at = jnp.asarray(np.kron(ah, aw).T)                    # (H*W, H2*W2)

    # Batch folded into the matmul: stacked rows + block-diagonal conv weight.
    x2d = x.reshape(n * c_in, h * w).astype(jnp.float32)              # (N*C_in, H*W)
    wb = jnp.kron(jnp.eye(n, dtype=jnp.float32), weight.astype(jnp.float32))
    b2 = jnp.tile(bias.astype(jnp.float32), n)[:, None]               # (N*C_out, 1)

    # Cost estimate (block-diag conv counts its zero blocks: the MXU executes them).
    m_interp = n * (c_out if conv_first else c_in)
    l_conv = (h * w) if conv_first else (h2 * w2)
    flops = 2 * (m_interp * (h * w) * (h2 * w2)
                 + (n * c_out) * (n * c_in) * l_conv)
    bytes_accessed = 4 * (n * c_in * h * w            # activations
                          + (h * w) * (h2 * w2)       # kron interp matrix
                          + (n * c_out) * (n * c_in)  # block-diag weight
                          + n * c_out                 # bias
                          + n * c_out * h2 * w2)      # output
    cost = pl.CostEstimate(flops=flops, transcendentals=0,
                           bytes_accessed=bytes_accessed)

    # Explicit VMEM budget: all operands resident (no pipelining, single invocation)
    # + the f32 intermediate + 2x headroom for padding, clamped below v7x's 64 MiB.
    interm_bytes = 4 * ((n * c_out) * (h * w) if conv_first
                        else (n * c_in) * (h2 * w2))
    vmem_limit = int(min(max(2 * (bytes_accessed + interm_bytes), 8 * 2**20),
                         48 * 2**20))

    out_flat = pl.pallas_call(
        functools.partial(_unet_up_kernel, conv_first=conv_first),
        out_shape=jax.ShapeDtypeStruct((n * c_out, h2 * w2), x.dtype),
        in_specs=[
            pl.BlockSpec(memory_space=pltpu.MemorySpace.VMEM),   # x2d
            pl.BlockSpec(memory_space=pltpu.MemorySpace.VMEM),   # wb
            pl.BlockSpec(memory_space=pltpu.MemorySpace.VMEM),   # at (kron interp)
            pl.BlockSpec(memory_space=pltpu.MemorySpace.VMEM),   # bias
        ],
        out_specs=pl.BlockSpec(memory_space=pltpu.MemorySpace.VMEM),
        compiler_params=pltpu.CompilerParams(vmem_limit_bytes=vmem_limit),
        cost_estimate=cost,
    )(x2d, wb, at, b2)

    # Free layout plumbing back to NCHW.
    return out_flat.reshape(n, c_out, h2, w2)


def _reference(x, weight, bias):
    """Pure-JAX reference in the original module order: upsample then 1x1 conv."""
    n, c_in, h, w = x.shape
    h2, w2 = 2 * h, 2 * w
    ah = jnp.asarray(_interp_matrix_np(h, h2))
    aw = jnp.asarray(_interp_matrix_np(w, w2))
    up = jnp.einsum('Oh,nchw->ncOw', ah, x)
    up = jnp.einsum('nchw,Ww->nchW', up, aw)
    return jnp.einsum('oc,nchw->nohw', weight, up) + bias[None, :, None, None]


if __name__ == "__main__":
    N, C_IN, C_OUT, H, W = 2, 4, 8, 16, 16

    key = jax.random.PRNGKey(0)
    kx, kw, kb = jax.random.split(key, 3)
    x = jax.random.normal(kx, (N, C_IN, H, W), dtype=jnp.float32)
    weight = jax.random.normal(kw, (C_OUT, C_IN), dtype=jnp.float32) * 0.1
    bias = jax.random.normal(kb, (C_OUT,), dtype=jnp.float32) * 0.1

    out = unet_bilinear_upsampling_block(x, weight, bias)
    out = jax.block_until_ready(out)

    ref = _reference(x, weight, bias)
    assert out.shape == (N, C_OUT, 2 * H, 2 * W), out.shape
    np.testing.assert_allclose(np.asarray(out), np.asarray(ref), rtol=1e-5, atol=1e-5)

    print("KERNEL_OK")
</pallas_src>

<mosaic_0001>
module attributes {stable_mosaic.version = 11 : i64} {
  func.func @_unet_up_kernel(%arg0: memref<8x256xf32, #tpu.memory_space<vmem>>, %arg1: memref<16x8xf32, #tpu.memory_space<vmem>>, %arg2: memref<256x1024xf32, #tpu.memory_space<vmem>>, %arg3: memref<16x1xf32, #tpu.memory_space<vmem>>, %arg4: memref<16x1024xf32, #tpu.memory_space<vmem>>) attributes {dimension_semantics = [], scalar_prefetch = 0 : i64, scratch_operands = 0 : i64, tpu.core_type = #tpu.core_type<tc>} {
    %c0 = arith.constant 0 : index
    %c0_0 = arith.constant 0 : index
    %0 = vector.load %arg0[%c0, %c0_0] : memref<8x256xf32, #tpu.memory_space<vmem>>, vector<8x256xf32>
    %c0_1 = arith.constant 0 : index
    %c0_2 = arith.constant 0 : index
    %1 = vector.load %arg1[%c0_1, %c0_2] : memref<16x8xf32, #tpu.memory_space<vmem>>, vector<16x8xf32>
    %c0_3 = arith.constant 0 : index
    %c0_4 = arith.constant 0 : index
    %2 = vector.load %arg2[%c0_3, %c0_4] : memref<256x1024xf32, #tpu.memory_space<vmem>>, vector<256x1024xf32>
    %cst = arith.constant dense<0.000000e+00> : vector<8x1024xf32>
    %3 = tpu.matmul %0, %2, %cst {dimension_numbers = #tpu.dot_dimension_numbers<[1], [0], [0], [1], [0, 0, 1, 1], [], []>} : vector<8x256xf32>, vector<256x1024xf32>, vector<8x1024xf32> -> vector<8x1024xf32>
    %cst_5 = arith.constant dense<0.000000e+00> : vector<16x1024xf32>
    %4 = tpu.matmul %1, %3, %cst_5 {dimension_numbers = #tpu.dot_dimension_numbers<[1], [0], [0], [1], [0, 0, 1, 1], [], []>} : vector<16x8xf32>, vector<8x1024xf32>, vector<16x1024xf32> -> vector<16x1024xf32>
    %c0_6 = arith.constant 0 : index
    %c0_7 = arith.constant 0 : index
    %5 = vector.load %arg3[%c0_6, %c0_7] : memref<16x1xf32, #tpu.memory_space<vmem>>, vector<16x1xf32>
    %6 = vector.broadcast %5 : vector<16x1xf32> to vector<16x1024xf32>
    %7 = arith.addf %4, %6 : vector<16x1024xf32>
    %c0_8 = arith.constant 0 : index
    %c0_9 = arith.constant 0 : index
    %8 = vector.load %arg4[%c0_8, %c0_9] : memref<16x1024xf32, #tpu.memory_space<vmem>>, vector<16x1024xf32>
    tpu.vector_store %arg4[%c0_8, %c0_9], %7 {strides = array<i32>} : memref<16x1024xf32, #tpu.memory_space<vmem>>, vector<16x1024xf32>,
    return
  }
}

</mosaic_0001>

<bundles_post_ra>
// kernel: tile.8
= control target key start
LH: loop header
LB: loop body
LE: loop exit
PB: predicated region body
PF: predicated region fallthrough
CT: control target
= control target key end

     0   :  { %s22_s0 = inlined_call_operand.vmem [shape: f32[8], index: 0, kind: input, shape index: {}]   ;;  %s23_s1 = inlined_call_operand.vmem [shape: f32[2,8], index: 1, kind: output, shape index: {}]  }
   0x1   :  { %v4_v0 = vld [vmem:[%s22_s0] ss:$0 sm:$0xff] }
   0x2   :  { %5 = vst [vmem:[%s23_s1] sm:$0x3] %v4_v0 }

// kernel: tile.0
= control target key start
LH: loop header
LB: loop body
LE: loop exit
PB: predicated region body
PF: predicated region fallthrough
CT: control target
= control target key end

     0   :  { %s66_s8 = smov 125   ;;  %vm7_vm0 = vcmask 7168   ;;  %s67_s11 = smov 126   ;;  %s117_s0 = inlined_call_operand.vmem [shape: f32[2,8], index: 0, kind: input, shape index: {}]   ;;  %s118_s1 = inlined_call_operand.vmem [shape: f32[16,1], index: 1, kind: output, shape index: {}]  }
   0x1   :  { %v4_v0 = vld [vmem:[%s117_s0] sm:$0x3]  ;;  %s65_s0 = smov 127   ;;  %s68_s12 = smov 124  }
   0x2   :  { %5 = vst [vmem:[#allocation0] sm:$0x3] %v4_v0  ;;  %s69_s13 = smov 123   ;;  %s70_s14 = smov 122  }
   0x3   :  { %s71_s15 = smov 121  }
   0x9   :  { %v9_v1 = vld [vmem:[#allocation0] sm:$0x3]  }
   0xa   :  { %v21_v2 = vld [vmem:[#allocation0] sm:$0x3]   ;;  %10 = vrot.lane.b32.xlu0 %v9_v1, %s65_s0 }
   0xb   :  { %22 = vrot.lane.b32.xlu1 %v21_v2, %s66_s8  ;;  %v15_v3 = vld [vmem:[#allocation0] sm:$0x3]  }
   0xc   :  { %v27_v4 = vld [vmem:[#allocation0] sm:$0x3]  }
   0xd   :  { %v6_v5 = vld [vmem:[#allocation0] sm:$0x3]  }
   0xe   :  { %8 = vst.msk [vmem:[%s118_s1] ss:$8 sm:$0x3] %vm7_vm0, %v6_v5   ;;  %16 = vrot.lane.b32.xlu0 %v15_v3, %s67_s11  ;;  %v33_v6 = vld [vmem:[#allocation0] sm:$0x3]  }
   0xf   :  { %28 = vrot.lane.b32.xlu1 %v27_v4, %s68_s12  ;;  %v39_v7 = vld [vmem:[#allocation0] sm:$0x3]  }
  0x10   :  { %v45_v8 = vld [vmem:[#allocation0] sm:$0x3]  }
  0x12   :  { %34 = vrot.lane.b32.xlu0 %v33_v6, %s69_s13 }
  0x13   :  { %40 = vrot.lane.b32.xlu1 %v39_v7, %s70_s14 }
  0x16   :  { %46 = vrot.lane.b32.xlu0 %v45_v8, %s71_s15 }
  0x7c   :  { %v11_v9 = vpop.permute.xlu0 %10  }
  0x7d   :  { %v23_v10 = vpop.permute.xlu1 %22   ;;  %51 = vst.msk [vmem:[%s118_s1 + $0x1] ss:$8 sm:$0x3] %vm7_vm0, %v11_v9  }
  0x7e   :  { %53 = vst.msk [vmem:[%s118_s1 + $0x3] ss:$8 sm:$0x3] %vm7_vm0, %v23_v10  }
  0x80   :  { %v17_v11 = vpop.permute.xlu0 %16  }
  0x81   :  { %v29_v12 = vpop.permute.xlu1 %28   ;;  %52 = vst.msk [vmem:[%s118_s1 + $0x2] ss:$8 sm:$0x3] %vm7_vm0, %v17_v11  }
  0x82   :  { %54 = vst.msk [vmem:[%s118_s1 + $0x4] ss:$8 sm:$0x3] %vm7_vm0, %v29_v12  }
  0x84   :  { %v35_v13 = vpop.permute.xlu0 %34  }
  0x85   :  { %v41_v14 = vpop.permute.xlu1 %40   ;;  %55 = vst.msk [vmem:[%s118_s1 + $0x5] ss:$8 sm:$0x3] %vm7_vm0, %v35_v13  }
  0x86   :  { %56 = vst.msk [vmem:[%s118_s1 + $0x6] ss:$8 sm:$0x3] %vm7_vm0, %v41_v14  }
  0x88   :  { %v47_v15 = vpop.permute.xlu0 %46  }
  0x89   :  { %57 = vst.msk [vmem:[%s118_s1 + $0x7] ss:$8 sm:$0x3] %vm7_vm0, %v47_v15  }

// kernel: unet_bilinear_upsampling_block.1
= control target key start
LH: loop header
LB: loop body
LE: loop exit
PB: predicated region body
PF: predicated region fallthrough
CT: control target
= control target key end

     0   :  { %9 = vsyncpa [#allocation3], 0  ;;  %s1217_s15 = smov [#allocation2]   ;;  %s1345_s0 = inlined_call_operand.vmem [shape: f32[8,256], index: 0, kind: input, shape index: {}]   ;;  %s1346_s1 = inlined_call_operand.vmem [shape: f32[16,8], index: 1, kind: input, shape index: {}]   ;;  %s1347_s2 = inlined_call_operand.hbm [shape: f32[256,1024], index: 2, kind: input, shape index: {}]   ;;  %s1348_s3 = inlined_call_operand.vmem [shape: f32[16,1], index: 3, kind: input, shape index: {}]   ;;  %s1349_s4 = inlined_call_operand.vmem [shape: f32[16,1024], index: 4, kind: output, shape index: {}]  }
   0x1   :  { %s19_s16 = sshll.u32 %s1217_s15, 4  ;;  %s1193_s19 = scalar_lea.hbm %s1347_s2, 32768  ;;  %s20_s16 = int_to_ptr.vmem [resolvable:$true] %s19_s16 }
   0x2   :  { %p1194_p0 = scmp.ne.s32.totalorder %s1347_s2, %s1193_s19  ;;  %p1197_p1 = scmp.lt.u32.totalorder %s1193_s19, %s1347_s2 }
   0x4   :  { %p1199_p2 = pnand %p1197_p1, %p1194_p0 }
   0x6   :  { %1202 = shalt.err (!%p1199_p2)
}
   0x7   :  { %s1203_s24 = scalar_lea.vmem %s20_s16, 32768  ;;  %p1208_p4 = scmp.lt.s32.totalorder %s20_s16, %s20_s16 }
   0x8   :  { %p1204_p3 = scmp.ne.s32.totalorder %s20_s16, %s1203_s24  ;;  %p1209_p5 = scmp.lt.s32.totalorder %s1203_s24, %s1203_s24 }
   0xa   :  { %p1210_p6 = por %p1209_p5, %p1208_p4 }
   0xc   :  { %p1211_p7 = pnand %p1210_p6, %p1204_p3 }
   0xe   :  { %1214 = shalt.err (!%p1211_p7)
}
   0xf   :  { %s1218_s25 = smov 1024   ;;  %s1219_s26 = smov 64  }
  0x10   :  { %25 = dma.hbm_to_vmem [thread:$0]  %s1347_s2, 32768, %s20_s16, [#allocation3], %s1218_s25, %s1218_s25, %s1219_s26  }
  0x11   :  { %1215 = dma.done.wait [#allocation3], 32768  }
  0x12   :  { %1216 = vsyncadd [#allocation3], 4294934528  ;;  %v36_v0 = vld [vmem:[#allocation2 + $0x8] sm:$0xff]  ;;  %v38_v2 = vld [vmem:[#allocation2 + $0x18] sm:$0xff]  ;;  %vm587_vm0 = vcmask 64512  }
  0x13   :  { %v44_v1 = vld [vmem:[#allocation2 + $0x48] sm:$0xff]  ;;  %v46_v4 = vld [vmem:[#allocation2 + $0x58] sm:$0xff]  ;;  %v35_v5 = vld [vmem:[#allocation2] sm:$0xff] }
  0x14   :  { %v931_v3 = vpack.c.bf16 %v44_v1, %v36_v0  ;;  %v43_v6 = vld [vmem:[#allocation2 + $0x40] sm:$0xff]  ;;  %v995_v7 = vpack.c.bf16 %v46_v4, %v38_v2  ;;  %v37_v9 = vld [vmem:[#allocation2 + $0x10] sm:$0xff]  ;;  %v52_v11 = vld [vmem:[#allocation2 + $0x88] sm:$0xff] }
  0x15   :  { %v933_v8 = vpack.c.bf16 %v43_v6, %v35_v5  ;;  %v45_v10 = vld [vmem:[#allocation2 + $0x50] sm:$0xff]  ;;  %v60_v13 = vld [vmem:[#allocation2 + $0xc8] sm:$0xff]  ;;  %v54_v14 = vld [vmem:[#allocation2 + $0x98] sm:$0xff] }
  0x16   :  { %932 = vmatprep.subr.bf16.mxu0 %v931_v3  ;;  %v997_v12 = vpack.c.bf16 %v45_v10, %v37_v9  ;;  %v62_v15 = vld [vmem:[#allocation2 + $0xd8] sm:$0xff]  ;;  %996 = vmatprep.subr.bf16.mxu1 %v995_v7  ;;  %v935_v16 = vpack.c.bf16 %v60_v13, %v52_v11  ;;  %v51_v18 = vld [vmem:[#allocation2 + $0x80] sm:$0xff]  ;;  %v53_v20 = vld [vmem:[#allocation2 + $0x90] sm:$0xff] }
  0x17   :  { %934 = vmatpush1.bf16.msra.mxu0 %v933_v8  ;;  %v999_v17 = vpack.c.bf16 %v62_v15, %v54_v14  ;;  %v59_v19 = vld [vmem:[#allocation2 + $0xc0] sm:$0xff]  ;;  %v61_v22 = vld [vmem:[#allocation2 + $0xd0] sm:$0xff]  ;;  %v68_v23 = vld [vmem:[#allocation2 + $0x108] sm:$0xff] }
  0x18   :  { %998 = vmatpush1.bf16.msra.mxu1 %v997_v12  ;;  %v937_v21 = vpack.c.bf16 %v59_v19, %v51_v18  ;;  %v76_v24 = vld [vmem:[#allocation2 + $0x148] sm:$0xff]  ;;  %936 = vmatprep.subr.bf16.mxu0 %v935_v16  ;;  %v1001_v25 = vpack.c.bf16 %v61_v22, %v53_v20  ;;  %v70_v27 = vld [vmem:[#allocation2 + $0x118] sm:$0xff]  ;;  %v67_v29 = vld [vmem:[#allocation2 + $0x100] sm:$0xff] }
  0x19   :  { %1000 = vmatprep.subr.bf16.mxu1 %v999_v17  ;;  %v939_v26 = vpack.c.bf16 %v76_v24, %v68_v23  ;;  %v78_v28 = vld [vmem:[#allocation2 + $0x158] sm:$0xff]  ;;  %v75_v31 = vld [vmem:[#allocation2 + $0x140] sm:$0xff]  ;;  %v69_v32 = vld [vmem:[#allocation2 + $0x110] sm:$0xff] }
  0x1a   :  { %v1003_v30 = vpack.c.bf16 %v78_v28, %v70_v27  ;;  %v77_v33 = vld [vmem:[#allocation2 + $0x150] sm:$0xff]  ;;  %v941_v34 = vpack.c.bf16 %v75_v31, %v67_v29  ;;  %v84_v35 = vld [vmem:[#allocation2 + $0x188] sm:$0xff]  ;;  %v86_v37 = vld [vmem:[#allocation2 + $0x198] sm:$0xff] }
  0x1b   :  { %938 = vmatpush1.bf16.msra.mxu0 %v937_v21  ;;  %v92_v36 = vld [vmem:[#allocation2 + $0x1c8] sm:$0xff]  ;;  %v1005_v38 = vpack.c.bf16 %v77_v33, %v69_v32  ;;  %v94_v40 = vld [vmem:[#allocation2 + $0x1d8] sm:$0xff]  ;;  %v83_v41 = vld [vmem:[#allocation2 + $0x180] sm:$0xff] }
  0x1c   :  { %1002 = vmatpush1.bf16.msra.mxu1 %v1001_v25  ;;  %940 = vmatprep.subr.bf16.mxu0 %v939_v26  ;;  %v943_v39 = vpack.c.bf16 %v92_v36, %v84_v35  ;;  %v91_v42 = vld [vmem:[#allocation2 + $0x1c0] sm:$0xff]  ;;  %v1007_v43 = vpack.c.bf16 %v94_v40, %v86_v37  ;;  %v85_v44 = vld [vmem:[#allocation2 + $0x190] sm:$0xff]  ;;  %v100_v46 = vld [vmem:[#allocation2 + $0x208] sm:$0xff] }
  0x1d   :  { %1004 = vmatprep.subr.bf16.mxu1 %v1003_v30  ;;  %v93_v45 = vld [vmem:[#allocation2 + $0x1d0] sm:$0xff]  ;;  %v108_v47 = vld [vmem:[#allocation2 + $0x248] sm:$0xff]  ;;  %v102_v48 = vld [vmem:[#allocation2 + $0x218] sm:$0xff]  ;;  %v945_v50 = vpack.c.bf16 %v91_v42, %v83_v41 }
  0x1e   :  { %v110_v49 = vld [vmem:[#allocation2 + $0x258] sm:$0xff]  ;;  %v1009_v51 = vpack.c.bf16 %v93_v45, %v85_v44  ;;  %v947_v52 = vpack.c.bf16 %v108_v47, %v100_v46  ;;  %v99_v53 = vld [vmem:[#allocation2 + $0x200] sm:$0xff]  ;;  %v101_v55 = vld [vmem:[#allocation2 + $0x210] sm:$0xff] }
  0x1f   :  { %942 = vmatpush1.bf16.msra.mxu0 %v941_v34  ;;  %v107_v54 = vld [vmem:[#allocation2 + $0x240] sm:$0xff]  ;;  %v1011_v56 = vpack.c.bf16 %v110_v49, %v102_v48  ;;  %v109_v57 = vld [vmem:[#allocation2 + $0x250] sm:$0xff]  ;;  %v116_v58 = vld [vmem:[#allocation2 + $0x288] sm:$0xff] }
  0x20   :  { %1006 = vmatpush1.bf16.msra.mxu1 %v1005_v38  ;;  %944 = vmatprep.subr.bf16.mxu0 %v943_v39  ;;  %v124_v59 = vld [vmem:[#allocation2 + $0x2c8] sm:$0xff]  ;;  %v118_v60 = vld [vmem:[#allocation2 + $0x298] sm:$0xff]  ;;  %v949_v62 = vpack.c.bf16 %v107_v54, %v99_v53  ;;  %v1013_v63 = vpack.c.bf16 %v109_v57, %v101_v55  ;;  %v115_v1 = vld [vmem:[#allocation2 + $0x280] sm:$0xff] }
  0x21   :  { %1008 = vmatprep.subr.bf16.mxu1 %v1007_v43  ;;  %v126_v61 = vld [vmem:[#allocation2 + $0x2d8] sm:$0xff]  ;;  %v951_v0 = vpack.c.bf16 %v124_v59, %v116_v58  ;;  %v123_v2 = vld [vmem:[#allocation2 + $0x2c0] sm:$0xff]  ;;  %v117_v3 = vld [vmem:[#allocation2 + $0x290] sm:$0xff] }
  0x22   :  { %v1015_v4 = vpack.c.bf16 %v126_v61, %v118_v60  ;;  %v125_v5 = vld [vmem:[#allocation2 + $0x2d0] sm:$0xff]  ;;  %v132_v6 = vld [vmem:[#allocation2 + $0x308] sm:$0xff]  ;;  %v134_v8 = vld [vmem:[#allocation2 + $0x318] sm:$0xff]  ;;  %v953_v10 = vpack.c.bf16 %v123_v2, %v115_v1 }
  0x23   :  { %946 = vmatpush1.bf16.msra.mxu0 %v945_v50  ;;  %v140_v7 = vld [vmem:[#allocation2 + $0x348] sm:$0xff]  ;;  %v142_v9 = vld [vmem:[#allocation2 + $0x358] sm:$0xff]  ;;  %v1017_v11 = vpack.c.bf16 %v125_v5, %v117_v3  ;;  %v131_v13 = vld [vmem:[#allocation2 + $0x300] sm:$0xff] }
  0x24   :  { %1010 = vmatpush1.bf16.msra.mxu1 %v1009_v51  ;;  %948 = vmatprep.subr.bf16.mxu0 %v947_v52  ;;  %v955_v12 = vpack.c.bf16 %v140_v7, %v132_v6  ;;  %v139_v14 = vld [vmem:[#allocation2 + $0x340] sm:$0xff]  ;;  %v133_v15 = vld [vmem:[#allocation2 + $0x310] sm:$0xff]  ;;  %v1019_v16 = vpack.c.bf16 %v142_v9, %v134_v8  ;;  %v148_v18 = vld [vmem:[#allocation2 + $0x388] sm:$0xff] }
  0x25   :  { %1012 = vmatprep.subr.bf16.mxu1 %v1011_v56  ;;  %v141_v17 = vld [vmem:[#allocation2 + $0x350] sm:$0xff]  ;;  %v156_v19 = vld [vmem:[#allocation2 + $0x3c8] sm:$0xff]  ;;  %v150_v20 = vld [vmem:[#allocation2 + $0x398] sm:$0xff]  ;;  %v957_v22 = vpack.c.bf16 %v139_v14, %v131_v13 }
  0x26   :  { %v158_v21 = vld [vmem:[#allocation2 + $0x3d8] sm:$0xff]  ;;  %v1021_v23 = vpack.c.bf16 %v141_v17, %v133_v15  ;;  %v959_v24 = vpack.c.bf16 %v156_v19, %v148_v18  ;;  %v147_v25 = vld [vmem:[#allocation2 + $0x380] sm:$0xff]  ;;  %v149_v27 = vld [vmem:[#allocation2 + $0x390] sm:$0xff] }
  0x27   :  { %950 = vmatpush1.bf16.msra.mxu0 %v949_v62  ;;  %v155_v26 = vld [vmem:[#allocation2 + $0x3c0] sm:$0xff]  ;;  %v1023_v28 = vpack.c.bf16 %v158_v21, %v150_v20  ;;  %v157_v29 = vld [vmem:[#allocation2 + $0x3d0] sm:$0xff]  ;;  %v164_v30 = vld [vmem:[#allocation2 + $0x408] sm:$0xff] }
  0x28   :  { %1014 = vmatpush1.bf16.msra.mxu1 %v1013_v63  ;;  %952 = vmatprep.subr.bf16.mxu0 %v951_v0  ;;  %v172_v31 = vld [vmem:[#allocation2 + $0x448] sm:$0xff]  ;;  %v166_v32 = vld [vmem:[#allocation2 + $0x418] sm:$0xff]  ;;  %v961_v34 = vpack.c.bf16 %v155_v26, %v147_v25  ;;  %v1025_v35 = vpack.c.bf16 %v157_v29, %v149_v27  ;;  %v163_v37 = vld [vmem:[#allocation2 + $0x400] sm:$0xff] }
  0x29   :  { %1016 = vmatprep.subr.bf16.mxu1 %v1015_v4  ;;  %v174_v33 = vld [vmem:[#allocation2 + $0x458] sm:$0xff]  ;;  %v963_v36 = vpack.c.bf16 %v172_v31, %v164_v30  ;;  %v171_v38 = vld [vmem:[#allocation2 + $0x440] sm:$0xff]  ;;  %v165_v39 = vld [vmem:[#allocation2 + $0x410] sm:$0xff] }
  0x2a   :  { %v1027_v40 = vpack.c.bf16 %v174_v33, %v166_v32  ;;  %v173_v41 = vld [vmem:[#allocation2 + $0x450] sm:$0xff]  ;;  %v180_v42 = vld [vmem:[#allocation2 + $0x488] sm:$0xff]  ;;  %v182_v44 = vld [vmem:[#allocation2 + $0x498] sm:$0xff]  ;;  %v965_v46 = vpack.c.bf16 %v171_v38, %v163_v37 }
  0x2b   :  { %954 = vmatpush1.bf16.msra.mxu0 %v953_v10  ;;  %v188_v43 = vld [vmem:[#allocation2 + $0x4c8] sm:$0xff]  ;;  %v190_v45 = vld [vmem:[#allocation2 + $0x4d8] sm:$0xff]  ;;  %v1029_v47 = vpack.c.bf16 %v173_v41, %v165_v39  ;;  %v179_v49 = vld [vmem:[#allocation2 + $0x480] sm:$0xff] }
  0x2c   :  { %1018 = vmatpush1.bf16.msra.mxu1 %v1017_v11  ;;  %956 = vmatprep.subr.bf16.mxu0 %v955_v12  ;;  %v967_v48 = vpack.c.bf16 %v188_v43, %v180_v42  ;;  %v187_v50 = vld [vmem:[#allocation2 + $0x4c0] sm:$0xff]  ;;  %v181_v51 = vld [vmem:[#allocation2 + $0x490] sm:$0xff]  ;;  %v1031_v52 = vpack.c.bf16 %v190_v45, %v182_v44  ;;  %v196_v54 = vld [vmem:[#allocation2 + $0x508] sm:$0xff] }
  0x2d   :  { %1020 = vmatprep.subr.bf16.mxu1 %v1019_v16  ;;  %v189_v53 = vld [vmem:[#allocation2 + $0x4d0] sm:$0xff]  ;;  %v204_v55 = vld [vmem:[#allocation2 + $0x548] sm:$0xff]  ;;  %v198_v56 = vld [vmem:[#allocation2 + $0x518] sm:$0xff]  ;;  %v969_v58 = vpack.c.bf16 %v187_v50, %v179_v49 }
  0x2e   :  { %v206_v57 = vld [vmem:[#allocation2 + $0x558] sm:$0xff]  ;;  %v1033_v59 = vpack.c.bf16 %v189_v53, %v181_v51  ;;  %v971_v60 = vpack.c.bf16 %v204_v55, %v196_v54  ;;  %v195_v61 = vld [vmem:[#allocation2 + $0x500] sm:$0xff]  ;;  %v197_v63 = vld [vmem:[#allocation2 + $0x510] sm:$0xff] }
  0x2f   :  { %958 = vmatpush1.bf16.msra.mxu0 %v957_v22  ;;  %v203_v62 = vld [vmem:[#allocation2 + $0x540] sm:$0xff]  ;;  %v1035_v0 = vpack.c.bf16 %v206_v57, %v198_v56  ;;  %v205_v1 = vld [vmem:[#allocation2 + $0x550] sm:$0xff]  ;;  %v212_v2 = vld [vmem:[#allocation2 + $0x588] sm:$0xff] }
  0x30   :  { %1022 = vmatpush1.bf16.msra.mxu1 %v1021_v23  ;;  %960 = vmatprep.subr.bf16.mxu0 %v959_v24  ;;  %v220_v3 = vld [vmem:[#allocation2 + $0x5c8] sm:$0xff]  ;;  %v214_v4 = vld [vmem:[#allocation2 + $0x598] sm:$0xff]  ;;  %v973_v6 = vpack.c.bf16 %v203_v62, %v195_v61  ;;  %v211_v7 = vld [vmem:[#allocation2 + $0x580] sm:$0xff]  ;;  %v1037_v8 = vpack.c.bf16 %v205_v1, %v197_v63 }
  0x31   :  { %1024 = vmatprep.subr.bf16.mxu1 %v1023_v28  ;;  %v222_v5 = vld [vmem:[#allocation2 + $0x5d8] sm:$0xff]  ;;  %v975_v9 = vpack.c.bf16 %v220_v3, %v212_v2  ;;  %v219_v10 = vld [vmem:[#allocation2 + $0x5c0] sm:$0xff]  ;;  %v213_v11 = vld [vmem:[#allocation2 + $0x590] sm:$0xff] }
  0x32   :  { %v221_v12 = vld [vmem:[#allocation2 + $0x5d0] sm:$0xff]  ;;  %v1039_v13 = vpack.c.bf16 %v222_v5, %v214_v4  ;;  %v228_v14 = vld [vmem:[#allocation2 + $0x608] sm:$0xff]  ;;  %v230_v17 = vld [vmem:[#allocation2 + $0x618] sm:$0xff]  ;;  %v977_v19 = vpack.c.bf16 %v219_v10, %v211_v7 }
  0x33   :  { %962 = vmatpush1.bf16.msra.mxu0 %v961_v34  ;;  %v236_v15 = vld [vmem:[#allocation2 + $0x648] sm:$0xff]  ;;  %v238_v18 = vld [vmem:[#allocation2 + $0x658] sm:$0xff]  ;;  %v1041_v20 = vpack.c.bf16 %v221_v12, %v213_v11  ;;  %v227_v22 = vld [vmem:[#allocation2 + $0x600] sm:$0xff] }
  0x34   :  { %1026 = vmatpush1.bf16.msra.mxu1 %v1025_v35  ;;  %964 = vmatprep.subr.bf16.mxu0 %v963_v36  ;;  %v1262_v16 = vld [vmem:[%s1345_s0 + $0x8] sm:$0xff]  ;;  %v979_v21 = vpack.c.bf16 %v236_v15, %v228_v14  ;;  %v235_v23 = vld [vmem:[#allocation2 + $0x640] sm:$0xff]  ;;  %v229_v24 = vld [vmem:[#allocation2 + $0x610] sm:$0xff]  ;;  %v1043_v25 = vpack.c.bf16 %v238_v18, %v230_v17 }
  0x35   :  { %1028 = vmatprep.subr.bf16.mxu1 %v1027_v40  ;;  %355 = vmatprep.mubr.f32.mxu0 %v1262_v16  ;;  %v237_v26 = vld [vmem:[#allocation2 + $0x650] sm:$0xff]  ;;  %v244_v27 = vld [vmem:[#allocation2 + $0x688] sm:$0xff]  ;;  %v246_v29 = vld [vmem:[#allocation2 + $0x698] sm:$0xff]  ;;  %v981_v31 = vpack.c.bf16 %v235_v23, %v227_v22 }
  0x36   :  { %426 = vmatprep.mubr.f32.mxu1 %v1262_v16  ;;  %v252_v28 = vld [vmem:[#allocation2 + $0x6c8] sm:$0xff]  ;;  %v254_v30 = vld [vmem:[#allocation2 + $0x6d8] sm:$0xff]  ;;  %v1045_v32 = vpack.c.bf16 %v237_v26, %v229_v24  ;;  %v243_v34 = vld [vmem:[#allocation2 + $0x680] sm:$0xff] }
  0x37   :  { %966 = vmatpush1.bf16.msra.mxu0 %v965_v46  ;;  %v983_v33 = vpack.c.bf16 %v252_v28, %v244_v27  ;;  %v251_v35 = vld [vmem:[#allocation2 + $0x6c0] sm:$0xff]  ;;  %v245_v36 = vld [vmem:[#allocation2 + $0x690] sm:$0xff]  ;;  %v1047_v37 = vpack.c.bf16 %v254_v30, %v246_v29  ;;  %v260_v39 = vld [vmem:[#allocation2 + $0x708] sm:$0xff] }
  0x38   :  { %1030 = vmatpush1.bf16.msra.mxu1 %v1029_v47  ;;  %968 = vmatprep.subr.bf16.mxu0 %v967_v48  ;;  %v253_v38 = vld [vmem:[#allocation2 + $0x6d0] sm:$0xff]  ;;  %v268_v40 = vld [vmem:[#allocation2 + $0x748] sm:$0xff]  ;;  %v262_v41 = vld [vmem:[#allocation2 + $0x718] sm:$0xff]  ;;  %v985_v43 = vpack.c.bf16 %v251_v35, %v243_v34 }
  0x39   :  { %1032 = vmatprep.subr.bf16.mxu1 %v1031_v52  ;;  %v270_v42 = vld [vmem:[#allocation2 + $0x758] sm:$0xff]  ;;  %v1049_v44 = vpack.c.bf16 %v253_v38, %v245_v36  ;;  %v987_v45 = vpack.c.bf16 %v268_v40, %v260_v39  ;;  %v259_v46 = vld [vmem:[#allocation2 + $0x700] sm:$0xff]  ;;  %v261_v48 = vld [vmem:[#allocation2 + $0x710] sm:$0xff] }
  0x3a   :  { %v267_v47 = vld [vmem:[#allocation2 + $0x740] sm:$0xff]  ;;  %v1051_v49 = vpack.c.bf16 %v270_v42, %v262_v41  ;;  %v269_v50 = vld [vmem:[#allocation2 + $0x750] sm:$0xff]  ;;  %v276_v51 = vld [vmem:[#allocation2 + $0x788] sm:$0xff] }
  0x3b   :  { %970 = vmatpush1.bf16.msra.mxu0 %v969_v58  ;;  %v284_v52 = vld [vmem:[#allocation2 + $0x7c8] sm:$0xff]  ;;  %v278_v53 = vld [vmem:[#allocation2 + $0x798] sm:$0xff]  ;;  %v989_v55 = vpack.c.bf16 %v267_v47, %v259_v46  ;;  %v1053_v56 = vpack.c.bf16 %v269_v50, %v261_v48  ;;  %v275_v58 = vld [vmem:[#allocation2 + $0x780] sm:$0xff] }
  0x3c   :  { %1034 = vmatpush1.bf16.msra.mxu1 %v1033_v59  ;;  %972 = vmatprep.subr.bf16.mxu0 %v971_v60  ;;  %v286_v54 = vld [vmem:[#allocation2 + $0x7d8] sm:$0xff]  ;;  %v991_v57 = vpack.c.bf16 %v284_v52, %v276_v51  ;;  %v283_v59 = vld [vmem:[#allocation2 + $0x7c0] sm:$0xff]  ;;  %v277_v60 = vld [vmem:[#allocation2 + $0x790] sm:$0xff] }
  0x3d   :  { %1036 = vmatprep.subr.bf16.mxu1 %v1035_v0  ;;  %v1055_v61 = vpack.c.bf16 %v286_v54, %v278_v53  ;;  %v285_v62 = vld [vmem:[#allocation2 + $0x7d0] sm:$0xff]  ;;  %v40_v63 = vld [vmem:[#allocation2 + $0x28] sm:$0xff]  ;;  %v42_v1 = vld [vmem:[#allocation2 + $0x38] sm:$0xff]  ;;  %v993_v3 = vpack.c.bf16 %v283_v59, %v275_v58 }
  0x3e   :  { %v48_v0 = vld [vmem:[#allocation2 + $0x68] sm:$0xff]  ;;  %v50_v2 = vld [vmem:[#allocation2 + $0x78] sm:$0xff]  ;;  %v1057_v4 = vpack.c.bf16 %v285_v62, %v277_v60  ;;  %v47_v7 = vld [vmem:[#allocation2 + $0x60] sm:$0xff] }
  0x3f   :  { %974 = vmatpush1.bf16.msra.mxu0 %v973_v6  ;;  %v1059_v5 = vpack.c.bf16 %v48_v0, %v40_v63  ;;  %v39_v6 = vld [vmem:[#allocation2 + $0x20] sm:$0xff]  ;;  %v49_v10 = vld [vmem:[#allocation2 + $0x70] sm:$0xff]  ;;  %v56_v11 = vld [vmem:[#allocation2 + $0xa8] sm:$0xff] }
  0x40   :  { %1038 = vmatpush1.bf16.msra.mxu1 %v1037_v8  ;;  %976 = vmatprep.subr.bf16.mxu0 %v975_v9  ;;  %v41_v8 = vld [vmem:[#allocation2 + $0x30] sm:$0xff]  ;;  %v1123_v9 = vpack.c.bf16 %v50_v2, %v42_v1  ;;  %v64_v12 = vld [vmem:[#allocation2 + $0xe8] sm:$0xff]  ;;  %v66_v14 = vld [vmem:[#allocation2 + $0xf8] sm:$0xff]  ;;  %v1061_v17 = vpack.c.bf16 %v47_v7, %v39_v6 }
  0x41   :  { %1040 = vmatprep.subr.bf16.mxu1 %v1039_v13  ;;  %v58_v13 = vld [vmem:[#allocation2 + $0xb8] sm:$0xff]  ;;  %v1269_v15 = vld [vmem:[%s1345_s0] sm:$0xff]  ;;  %v1125_v18 = vpack.c.bf16 %v49_v10, %v41_v8  ;;  %v57_v22 = vld [vmem:[#allocation2 + $0xb0] sm:$0xff] }
  0x42   :  { %v1127_v23 = vpack.c.bf16 %v66_v14, %v58_v13  ;;  %v65_v24 = vld [vmem:[#allocation2 + $0xf0] sm:$0xff]  ;;  %v80_v26 = vld [vmem:[#allocation2 + $0x168] sm:$0xff]  ;;  %v74_v27 = vld [vmem:[#allocation2 + $0x138] sm:$0xff] }
  0x43   :  { %978 = vmatpush1.bf16.msra.mxu0 %v977_v19  ;;  %v1063_v19 = vpack.c.bf16 %v64_v12, %v56_v11  ;;  %v82_v28 = vld [vmem:[#allocation2 + $0x178] sm:$0xff]  ;;  %v1129_v30 = vpack.c.bf16 %v65_v24, %v57_v22  ;;  %v73_v34 = vld [vmem:[#allocation2 + $0x130] sm:$0xff]  ;;  %v96_v38 = vld [vmem:[#allocation2 + $0x1e8] sm:$0xff] }
  0x44   :  { %1042 = vmatpush1.bf16.msra.mxu1 %v1041_v20  ;;  %980 = vmatprep.subr.bf16.mxu0 %v979_v21  ;;  %v55_v20 = vld [vmem:[#allocation2 + $0xa0] sm:$0xff]  ;;  %v1131_v35 = vpack.c.bf16 %v82_v28, %v74_v27  ;;  %v81_v36 = vld [vmem:[#allocation2 + $0x170] sm:$0xff]  ;;  %v90_v39 = vld [vmem:[#allocation2 + $0x1b8] sm:$0xff] }
  0x45   :  { %1044 = vmatprep.subr.bf16.mxu1 %v1043_v25  ;;  %v63_v21 = vld [vmem:[#allocation2 + $0xe0] sm:$0xff]  ;;  %v72_v25 = vld [vmem:[#allocation2 + $0x128] sm:$0xff]  ;;  %v98_v40 = vld [vmem:[#allocation2 + $0x1f8] sm:$0xff]  ;;  %v1133_v42 = vpack.c.bf16 %v81_v36, %v73_v34 }
  0x46   :  { %v1065_v29 = vpack.c.bf16 %v63_v21, %v55_v20  ;;  %v89_v46 = vld [vmem:[#allocation2 + $0x1b0] sm:$0xff]  ;;  %v1135_v47 = vpack.c.bf16 %v98_v40, %v90_v39  ;;  %v112_v50 = vld [vmem:[#allocation2 + $0x268] sm:$0xff]  ;;  %v106_v51 = vld [vmem:[#allocation2 + $0x238] sm:$0xff] }
  0x47   :  { %982 = vmatpush1.bf16.msra.mxu0 %v981_v31  ;;  %v1067_v31 = vpack.c.bf16 %v80_v26, %v72_v25  ;;  %v97_v48 = vld [vmem:[#allocation2 + $0x1f0] sm:$0xff]  ;;  %v114_v52 = vld [vmem:[#allocation2 + $0x278] sm:$0xff]  ;;  %v120_v60 = vld [vmem:[#allocation2 + $0x2a8] sm:$0xff] }
  0x48   :  { %1046 = vmatpush1.bf16.msra.mxu1 %v1045_v32  ;;  %984 = vmatprep.subr.bf16.mxu0 %v983_v33  ;;  %v71_v32 = vld [vmem:[#allocation2 + $0x120] sm:$0xff]  ;;  %v1139_v58 = vpack.c.bf16 %v114_v52, %v106_v51  ;;  %v113_v59 = vld [vmem:[#allocation2 + $0x270] sm:$0xff]  ;;  %v122_v62 = vld [vmem:[#allocation2 + $0x2b8] sm:$0xff] }
  0x49   :  { %1048 = vmatprep.subr.bf16.mxu1 %v1047_v37  ;;  %v79_v33 = vld [vmem:[#allocation2 + $0x160] sm:$0xff]  ;;  %v88_v37 = vld [vmem:[#allocation2 + $0x1a8] sm:$0xff]  ;;  %v130_v63 = vld [vmem:[#allocation2 + $0x2f8] sm:$0xff] }
  0x4a   :  { %v1069_v41 = vpack.c.bf16 %v79_v33, %v71_v32  ;;  %v1143_v6 = vpack.c.bf16 %v130_v63, %v122_v62  ;;  %v129_v7 = vld [vmem:[#allocation2 + $0x2f0] sm:$0xff]  ;;  %v136_v8 = vld [vmem:[#allocation2 + $0x328] sm:$0xff]  ;;  %v138_v10 = vld [vmem:[#allocation2 + $0x338] sm:$0xff] }
  0x4b   :  { %986 = vmatpush1.bf16.msra.mxu0 %v985_v43  ;;  %v1071_v43 = vpack.c.bf16 %v96_v38, %v88_v37  ;;  %v146_v11 = vld [vmem:[#allocation2 + $0x378] sm:$0xff]  ;;  %v145_v21 = vld [vmem:[#allocation2 + $0x370] sm:$0xff]  ;;  %v152_v22 = vld [vmem:[#allocation2 + $0x3a8] sm:$0xff] }
  0x4c   :  { %1050 = vmatpush1.bf16.msra.mxu1 %v1049_v44  ;;  %988 = vmatprep.subr.bf16.mxu0 %v987_v45  ;;  %v87_v44 = vld [vmem:[#allocation2 + $0x1a0] sm:$0xff]  ;;  %v1147_v20 = vpack.c.bf16 %v146_v11, %v138_v10  ;;  %v154_v24 = vld [vmem:[#allocation2 + $0x3b8] sm:$0xff]  ;;  %v161_v33 = vld [vmem:[#allocation2 + $0x3f0] sm:$0xff] }
  0x4d   :  { %1052 = vmatprep.subr.bf16.mxu1 %v1051_v49  ;;  %v95_v45 = vld [vmem:[#allocation2 + $0x1e0] sm:$0xff]  ;;  %v104_v49 = vld [vmem:[#allocation2 + $0x228] sm:$0xff]  ;;  %v162_v25 = vld [vmem:[#allocation2 + $0x3f8] sm:$0xff] }
  0x4e   :  { %v1073_v53 = vpack.c.bf16 %v95_v45, %v87_v44  ;;  %v1075_v54 = vpack.c.bf16 %v112_v50, %v104_v49  ;;  %v1151_v32 = vpack.c.bf16 %v162_v25, %v154_v24  ;;  %v168_v34 = vld [vmem:[#allocation2 + $0x428] sm:$0xff]  ;;  %v170_v36 = vld [vmem:[#allocation2 + $0x438] sm:$0xff]  ;;  %v177_v45 = vld [vmem:[#allocation2 + $0x470] sm:$0xff] }
  0x4f   :  { %990 = vmatpush1.bf16.msra.mxu0 %v989_v55  ;;  %v103_v55 = vld [vmem:[#allocation2 + $0x220] sm:$0xff]  ;;  %v178_v37 = vld [vmem:[#allocation2 + $0x478] sm:$0xff] }
  0x50   :  { %1054 = vmatpush1.bf16.msra.mxu1 %v1053_v56  ;;  %992 = vmatprep.subr.bf16.mxu0 %v991_v57  ;;  %v111_v56 = vld [vmem:[#allocation2 + $0x260] sm:$0xff]  ;;  %v105_v57 = vld [vmem:[#allocation2 + $0x230] sm:$0xff]  ;;  %v1155_v44 = vpack.c.bf16 %v178_v37, %v170_v36  ;;  %v194_v49 = vld [vmem:[#allocation2 + $0x4f8] sm:$0xff] }
  0x51   :  { %1056 = vmatprep.subr.bf16.mxu1 %v1055_v61  ;;  %v128_v61 = vld [vmem:[#allocation2 + $0x2e8] sm:$0xff]  ;;  %v1077_v0 = vpack.c.bf16 %v111_v56, %v103_v55  ;;  %v1141_v1 = vpack.c.bf16 %v113_v59, %v105_v57  ;;  %v193_v56 = vld [vmem:[#allocation2 + $0x4f0] sm:$0xff]  ;;  %v202_v59 = vld [vmem:[#allocation2 + $0x538] sm:$0xff] }
  0x52   :  { %v1079_v2 = vpack.c.bf16 %v128_v61, %v120_v60  ;;  %v200_v57 = vld [vmem:[#allocation2 + $0x528] sm:$0xff]  ;;  %v210_v60 = vld [vmem:[#allocation2 + $0x578] sm:$0xff] }
  0x53   :  { %994 = vmatpush1.bf16.msra.mxu0 %v993_v3  ;;  %v119_v3 = vld [vmem:[#allocation2 + $0x2a0] sm:$0xff] }
  0x54   :  { %1058 = vmatpush1.bf16.msra.mxu1 %v1057_v4  ;;  %1060 = vmatprep.subr.bf16.mxu0 %v1059_v5  ;;  %v127_v4 = vld [vmem:[#allocation2 + $0x2e0] sm:$0xff]  ;;  %v121_v5 = vld [vmem:[#allocation2 + $0x2b0] sm:$0xff] }
  0x55   :  { %1124 = vmatprep.subr.bf16.mxu1 %v1123_v9  ;;  %v144_v9 = vld [vmem:[#allocation2 + $0x368] sm:$0xff]  ;;  %v1081_v12 = vpack.c.bf16 %v127_v4, %v119_v3  ;;  %v1145_v13 = vpack.c.bf16 %v129_v7, %v121_v5  ;;  %v1163_v3 = vpack.c.bf16 %v210_v60, %v202_v59  ;;  %v209_v4 = vld [vmem:[#allocation2 + $0x570] sm:$0xff]  ;;  %v218_v7 = vld [vmem:[#allocation2 + $0x5b8] sm:$0xff] }
  0x56   :  { %356 = vmatmul.mubr.f32.vlgmr.msra.gmra.mrb[0].mxu0 %v1269_v15  ;;  %v1083_v14 = vpack.c.bf16 %v144_v9, %v136_v8  ;;  %v216_v5 = vld [vmem:[#allocation2 + $0x5a8] sm:$0xff]  ;;  %v226_v8 = vld [vmem:[#allocation2 + $0x5f8] sm:$0xff] }
  0x57   :  { %427 = vmatmul.mubr.f32.vlgmr.msra.gmra.mrb[0].mxu1 %v1269_v15  ;;  %1062 = vmatpush1.bf16.msra.mxu0 %v1061_v17  ;;  %v135_v17 = vld [vmem:[#allocation2 + $0x320] sm:$0xff] }
  0x58   :  { %1126 = vmatpush1.bf16.msra.mxu1 %v1125_v18  ;;  %1064 = vmatprep.subr.bf16.mxu0 %v1063_v19  ;;  %v143_v18 = vld [vmem:[#allocation2 + $0x360] sm:$0xff]  ;;  %v137_v19 = vld [vmem:[#allocation2 + $0x330] sm:$0xff] }
  0x59   :  { %1128 = vmatprep.subr.bf16.mxu1 %v1127_v23  ;;  %497 = vmatprep.mubr.f32.mxu0 %v1262_v16  ;;  %v160_v23 = vld [vmem:[#allocation2 + $0x3e8] sm:$0xff]  ;;  %v1085_v26 = vpack.c.bf16 %v143_v18, %v135_v17  ;;  %v1149_v27 = vpack.c.bf16 %v145_v21, %v137_v19  ;;  %v1167_v17 = vpack.c.bf16 %v226_v8, %v218_v7  ;;  %v225_v18 = vld [vmem:[#allocation2 + $0x5f0] sm:$0xff]  ;;  %v234_v21 = vld [vmem:[#allocation2 + $0x638] sm:$0xff] }
  0x5a   :  { %568 = vmatprep.mubr.f32.mxu1 %v1262_v16  ;;  %v1137_v16 = vpack.c.bf16 %v97_v48, %v89_v46  ;;  %v1087_v28 = vpack.c.bf16 %v160_v23, %v152_v22  ;;  %v184_v46 = vld [vmem:[#allocation2 + $0x4a8] sm:$0xff]  ;;  %v186_v48 = vld [vmem:[#allocation2 + $0x4b8] sm:$0xff] }
  0x5b   :  { %1066 = vmatpush1.bf16.msra.mxu0 %v1065_v29  ;;  %v151_v29 = vld [vmem:[#allocation2 + $0x3a0] sm:$0xff]  ;;  %v1159_v55 = vpack.c.bf16 %v194_v49, %v186_v48  ;;  %v232_v19 = vld [vmem:[#allocation2 + $0x628] sm:$0xff]  ;;  %v242_v22 = vld [vmem:[#allocation2 + $0x678] sm:$0xff] }
  0x5c   :  { %1130 = vmatpush1.bf16.msra.mxu1 %v1129_v30  ;;  %1068 = vmatprep.subr.bf16.mxu0 %v1067_v31  ;;  %v159_v30 = vld [vmem:[#allocation2 + $0x3e0] sm:$0xff]  ;;  %v153_v31 = vld [vmem:[#allocation2 + $0x3b0] sm:$0xff]  ;;  %v576_v7 = vld [vmem:[%s1348_s3 + $0x8] sm:$0xff] }
  0x5d   :  { %1132 = vmatprep.subr.bf16.mxu1 %v1131_v35  ;;  %v176_v35 = vld [vmem:[#allocation2 + $0x468] sm:$0xff]  ;;  %v1089_v38 = vpack.c.bf16 %v159_v30, %v151_v29  ;;  %v1153_v39 = vpack.c.bf16 %v161_v33, %v153_v31  ;;  %v1171_v29 = vpack.c.bf16 %v242_v22, %v234_v21  ;;  %v241_v30 = vld [vmem:[#allocation2 + $0x670] sm:$0xff]  ;;  %v250_v33 = vld [vmem:[#allocation2 + $0x6b8] sm:$0xff] }
  0x5e   :  { %v1091_v40 = vpack.c.bf16 %v176_v35, %v168_v34  ;;  %v248_v31 = vld [vmem:[#allocation2 + $0x6a8] sm:$0xff]  ;;  %v258_v34 = vld [vmem:[#allocation2 + $0x6f8] sm:$0xff] }
  0x5f   :  { %1070 = vmatpush1.bf16.msra.mxu0 %v1069_v41  ;;  %v167_v41 = vld [vmem:[#allocation2 + $0x420] sm:$0xff] }
  0x60   :  { %1134 = vmatpush1.bf16.msra.mxu1 %v1133_v42  ;;  %1072 = vmatprep.subr.bf16.mxu0 %v1071_v43  ;;  %v175_v42 = vld [vmem:[#allocation2 + $0x460] sm:$0xff]  ;;  %v169_v43 = vld [vmem:[#allocation2 + $0x430] sm:$0xff] }
  0x61   :  { %1136 = vmatprep.subr.bf16.mxu1 %v1135_v47  ;;  %v192_v47 = vld [vmem:[#allocation2 + $0x4e8] sm:$0xff]  ;;  %v1093_v50 = vpack.c.bf16 %v175_v42, %v167_v41  ;;  %v1157_v51 = vpack.c.bf16 %v177_v45, %v169_v43  ;;  %v1175_v41 = vpack.c.bf16 %v258_v34, %v250_v33  ;;  %v257_v42 = vld [vmem:[#allocation2 + $0x6f0] sm:$0xff]  ;;  %v266_v45 = vld [vmem:[#allocation2 + $0x738] sm:$0xff] }
  0x62   :  { %v1095_v52 = vpack.c.bf16 %v192_v47, %v184_v46  ;;  %v264_v43 = vld [vmem:[#allocation2 + $0x728] sm:$0xff]  ;;  %v274_v46 = vld [vmem:[#allocation2 + $0x778] sm:$0xff] }
  0x63   :  { %1074 = vmatpush1.bf16.msra.mxu0 %v1073_v53  ;;  %v183_v53 = vld [vmem:[#allocation2 + $0x4a0] sm:$0xff] }
  0x64   :  { %1138 = vmatpush1.bf16.msra.mxu1 %v1137_v16  ;;  %1076 = vmatprep.subr.bf16.mxu0 %v1075_v54  ;;  %v191_v16 = vld [vmem:[#allocation2 + $0x4e0] sm:$0xff]  ;;  %v185_v54 = vld [vmem:[#allocation2 + $0x4b0] sm:$0xff] }
  0x65   :  { %1140 = vmatprep.subr.bf16.mxu1 %v1139_v58  ;;  %v208_v58 = vld [vmem:[#allocation2 + $0x568] sm:$0xff]  ;;  %v1097_v61 = vpack.c.bf16 %v191_v16, %v183_v53  ;;  %v1161_v62 = vpack.c.bf16 %v193_v56, %v185_v54  ;;  %v1179_v53 = vpack.c.bf16 %v274_v46, %v266_v45  ;;  %v273_v16 = vld [vmem:[#allocation2 + $0x770] sm:$0xff]  ;;  %v282_v56 = vld [vmem:[#allocation2 + $0x7b8] sm:$0xff] }
  0x66   :  { %v1099_v63 = vpack.c.bf16 %v208_v58, %v200_v57  ;;  %v280_v54 = vld [vmem:[#allocation2 + $0x7a8] sm:$0xff]  ;;  %v290_v57 = vld [vmem:[#allocation2 + $0x7f8] sm:$0xff] }
  0x67   :  { %1078 = vmatpush1.bf16.msra.mxu0 %v1077_v0  ;;  %v199_v0 = vld [vmem:[#allocation2 + $0x520] sm:$0xff] }
  0x68   :  { %1142 = vmatpush1.bf16.msra.mxu1 %v1141_v1  ;;  %1080 = vmatprep.subr.bf16.mxu0 %v1079_v2  ;;  %v207_v1 = vld [vmem:[#allocation2 + $0x560] sm:$0xff]  ;;  %v201_v2 = vld [vmem:[#allocation2 + $0x530] sm:$0xff] }
  0x69   :  { %1144 = vmatprep.subr.bf16.mxu1 %v1143_v6  ;;  %v224_v6 = vld [vmem:[#allocation2 + $0x5e8] sm:$0xff]  ;;  %v1101_v9 = vpack.c.bf16 %v207_v1, %v199_v0  ;;  %v1165_v10 = vpack.c.bf16 %v209_v4, %v201_v2  ;;  %v281_v0 = vld [vmem:[#allocation2 + $0x7b0] sm:$0xff]  ;;  %v1220_v4 = vmov 0.0  }
  0x6a   :  { %v1103_v11 = vpack.c.bf16 %v224_v6, %v216_v5  ;;  %v289_v1 = vld [vmem:[#allocation2 + $0x7f0] sm:$0xff]  ;;  %v575_v5 = vld [vmem:[%s1348_s3] sm:$0xff]  ;;  %v1221_v6 = vmov 0  }
  0x6b   :  { %1082 = vmatpush1.bf16.msra.mxu0 %v1081_v12  ;;  %v215_v12 = vld [vmem:[#allocation2 + $0x5a0] sm:$0xff]  ;;  %1192 = vset.pattern.permute.xlu0 %v1221_v6 }
  0x6c   :  { %1146 = vmatpush1.bf16.msra.mxu1 %v1145_v13  ;;  %1084 = vmatprep.subr.bf16.mxu0 %v1083_v14  ;;  %v223_v13 = vld [vmem:[#allocation2 + $0x5e0] sm:$0xff]  ;;  %v217_v14 = vld [vmem:[#allocation2 + $0x5b0] sm:$0xff] }
  0x6d   :  { %1148 = vmatprep.subr.bf16.mxu1 %v1147_v20  ;;  %v240_v20 = vld [vmem:[#allocation2 + $0x668] sm:$0xff]  ;;  %v1105_v23 = vpack.c.bf16 %v223_v13, %v215_v12  ;;  %v1169_v24 = vpack.c.bf16 %v225_v18, %v217_v14  ;;  %579 = vperm.xlu0 %1192, %v575_v5  }
  0x6e   :  { %v1107_v25 = vpack.c.bf16 %v240_v20, %v232_v19  ;;  %v34_v12 = vld [vmem:[%s1346_s1 + $0x8] sm:$0xff] }
  0x6f   :  { %1086 = vmatpush1.bf16.msra.mxu0 %v1085_v26  ;;  %v231_v26 = vld [vmem:[#allocation2 + $0x620] sm:$0xff] }
  0x70   :  { %1150 = vmatpush1.bf16.msra.mxu1 %v1149_v27  ;;  %1088 = vmatprep.subr.bf16.mxu0 %v1087_v28  ;;  %v239_v27 = vld [vmem:[#allocation2 + $0x660] sm:$0xff]  ;;  %v233_v28 = vld [vmem:[#allocation2 + $0x630] sm:$0xff] }
  0x71   :  { %1152 = vmatprep.subr.bf16.mxu1 %v1151_v32  ;;  %v256_v32 = vld [vmem:[#allocation2 + $0x6e8] sm:$0xff]  ;;  %v1109_v35 = vpack.c.bf16 %v239_v27, %v231_v26  ;;  %v1173_v36 = vpack.c.bf16 %v241_v30, %v233_v28  ;;  %584 = vperm.xlu0 %1192, %v576_v7  }
  0x72   :  { %v1111_v37 = vpack.c.bf16 %v256_v32, %v248_v31 }
  0x73   :  { %1090 = vmatpush1.bf16.msra.mxu0 %v1089_v38  ;;  %v247_v38 = vld [vmem:[#allocation2 + $0x6a0] sm:$0xff] }
  0x74   :  { %1154 = vmatpush1.bf16.msra.mxu1 %v1153_v39  ;;  %1092 = vmatprep.subr.bf16.mxu0 %v1091_v40  ;;  %v255_v39 = vld [vmem:[#allocation2 + $0x6e0] sm:$0xff]  ;;  %v249_v40 = vld [vmem:[#allocation2 + $0x6b0] sm:$0xff] }
  0x75   :  { %1156 = vmatprep.subr.bf16.mxu1 %v1155_v44  ;;  %v272_v44 = vld [vmem:[#allocation2 + $0x768] sm:$0xff]  ;;  %v1113_v47 = vpack.c.bf16 %v255_v39, %v247_v38  ;;  %v1177_v48 = vpack.c.bf16 %v257_v42, %v249_v40 }
  0x76   :  { %v1115_v49 = vpack.c.bf16 %v272_v44, %v264_v43 }
  0x77   :  { %1094 = vmatpush1.bf16.msra.mxu0 %v1093_v50  ;;  %v263_v50 = vld [vmem:[#allocation2 + $0x720] sm:$0xff] }
  0x78   :  { %1158 = vmatpush1.bf16.msra.mxu1 %v1157_v51  ;;  %1096 = vmatprep.subr.bf16.mxu0 %v1095_v52  ;;  %v271_v51 = vld [vmem:[#allocation2 + $0x760] sm:$0xff]  ;;  %v265_v52 = vld [vmem:[#allocation2 + $0x730] sm:$0xff] }
  0x79   :  { %1160 = vmatprep.subr.bf16.mxu1 %v1159_v55  ;;  %v288_v55 = vld [vmem:[#allocation2 + $0x7e8] sm:$0xff]  ;;  %v1117_v58 = vpack.c.bf16 %v271_v51, %v263_v50  ;;  %v1181_v59 = vpack.c.bf16 %v273_v16, %v265_v52 }
  0x7a   :  { %v1119_v60 = vpack.c.bf16 %v288_v55, %v280_v54 }
  0x7b   :  { %1098 = vmatpush1.bf16.msra.mxu0 %v1097_v61  ;;  %v279_v61 = vld [vmem:[#allocation2 + $0x7a0] sm:$0xff] }
  0x7c   :  { %1162 = vmatpush1.bf16.msra.mxu1 %v1161_v62  ;;  %1100 = vmatprep.subr.bf16.mxu0 %v1099_v63  ;;  %v287_v62 = vld [vmem:[#allocation2 + $0x7e0] sm:$0xff]  ;;  %v1183_v63 = vpack.c.bf16 %v290_v57, %v282_v56 }
  0x7d   :  { %1164 = vmatprep.subr.bf16.mxu1 %v1163_v3  ;;  %v1121_v2 = vpack.c.bf16 %v287_v62, %v279_v61  ;;  %v1185_v3 = vpack.c.bf16 %v289_v1, %v281_v0 }
  0x7f   :  { %1102 = vmatpush1.bf16.msra.mxu0 %v1101_v9 }
  0x80   :  { %1166 = vmatpush1.bf16.msra.mxu1 %v1165_v10  ;;  %1104 = vmatprep.subr.bf16.mxu0 %v1103_v11 }
  0x81   :  { %1168 = vmatprep.subr.bf16.mxu1 %v1167_v17 }
  0x83   :  { %1106 = vmatpush1.bf16.msra.mxu0 %v1105_v23 }
  0x84   :  { %1170 = vmatpush1.bf16.msra.mxu1 %v1169_v24  ;;  %1108 = vmatprep.subr.bf16.mxu0 %v1107_v25 }
  0x85   :  { %1172 = vmatprep.subr.bf16.mxu1 %v1171_v29 }
  0x87   :  { %1110 = vmatpush1.bf16.msra.mxu0 %v1109_v35 }
  0x88   :  { %1174 = vmatpush1.bf16.msra.mxu1 %v1173_v36  ;;  %1112 = vmatprep.subr.bf16.mxu0 %v1111_v37 }
  0x89   :  { %1176 = vmatprep.subr.bf16.mxu1 %v1175_v41 }
  0x8b   :  { %1114 = vmatpush1.bf16.msra.mxu0 %v1113_v47 }
  0x8c   :  { %1178 = vmatpush1.bf16.msra.mxu1 %v1177_v48  ;;  %1116 = vmatprep.subr.bf16.mxu0 %v1115_v49 }
  0x8d   :  { %1180 = vmatprep.subr.bf16.mxu1 %v1179_v53 }
  0x8f   :  { %1118 = vmatpush1.bf16.msra.mxu0 %v1117_v58 }
  0x90   :  { %1182 = vmatpush1.bf16.msra.mxu1 %v1181_v59  ;;  %1120 = vmatprep.subr.bf16.mxu0 %v1119_v60 }
  0x91   :  { %1184 = vmatprep.subr.bf16.mxu1 %v1183_v63 }
  0x93   :  { %1122 = vmatpush1.bf16.msra.mxu0 %v1121_v2 }
  0x94   :  { %1186 = vmatpush1.bf16.msra.mxu1 %v1185_v3 }
  0x96   :  { %498 = vmatmul.mubr.f32.vlgmr.msra.gmra.mrb[2].mxu0 %v1269_v15 }
  0x97   :  { %569 = vmatmul.mubr.f32.vlgmr.msra.gmra.mrb[2].mxu1 %v1269_v15  ;;  %658 = vmatprep.mubr.f32.mxu0 %v1220_v4  ;;  %v33_v15 = vld [vmem:[%s1346_s1] sm:$0xff] }
  0x98   :  { %735 = vmatprep.mubr.f32.mxu1 %v1220_v4 }
  0xec   :  { %v580_v19 = vpop.permute.xlu0 %579 }
  0xf0   :  { %v585_v27 = vpop.permute.xlu0 %584 }
 0x129   :  { %v357_v8 = vpop.f32.mrb[0].mxu0 }
 0x12a   :  { %v428_v9 = vpop.f32.mrb[0].mxu1  ;;  %v359_v10 = vpop.f32.mrb[1].mxu0 }
 0x12b   :  { %v430_v11 = vpop.f32.mrb[1].mxu1  ;;  %594 = vmatprep.subr.mxu0 %v359_v10 }
 0x12c   :  { %671 = vmatprep.subr.mxu1 %v430_v11  ;;  %595 = vmatpush1.msra.mxu0 %v357_v8 }
 0x12d   :  { %672 = vmatpush1.msra.mxu1 %v428_v9  ;;  %923 = vmatmul.mubr.msk.f32.vlgmr.msra.gmra.mrb[4].mxu0 %vm587_vm0, %v33_v15 }
 0x12e   :  { %925 = vmatmul.mubr.msk.f32.vlgmr.msra.gmra.mrb[4].mxu1 %vm587_vm0, %v33_v15  ;;  %664 = vmatprep.mubr.f32.mxu0 %v1220_v4 }
 0x12f   :  { %741 = vmatprep.mubr.f32.mxu1 %v1220_v4 }
 0x131   :  { %924 = vmatmul.mubr.msk.f32.gmra.mrb[6].mxu0 %vm587_vm0, %v34_v12 }
 0x132   :  { %926 = vmatmul.mubr.msk.f32.gmra.mrb[6].mxu1 %vm587_vm0, %v34_v12  ;;  %812 = vmatprep.mubr.f32.mxu0 %v1220_v4 }
 0x133   :  { %889 = vmatprep.mubr.f32.mxu1 %v1220_v4 }
 0x169   :  { %v499_v13 = vpop.f32.mrb[2].mxu0 }
 0x16a   :  { %v570_v14 = vpop.f32.mrb[2].mxu1  ;;  %v501_v17 = vpop.f32.mrb[3].mxu0 }
 0x16b   :  { %v572_v18 = vpop.f32.mrb[3].mxu1  ;;  %748 = vmatprep.subr.mxu0 %v501_v17 }
 0x16c   :  { %825 = vmatprep.subr.mxu1 %v572_v18  ;;  %749 = vmatpush1.msra.mxu0 %v499_v13 }
 0x16d   :  { %826 = vmatpush1.msra.mxu1 %v570_v14  ;;  %927 = vmatmul.mubr.msk.f32.vlgmr.msra.gmra.mrb[8].mxu0 %vm587_vm0, %v33_v15 }
 0x16e   :  { %929 = vmatmul.mubr.msk.f32.vlgmr.msra.gmra.mrb[8].mxu1 %vm587_vm0, %v33_v15  ;;  %818 = vmatprep.mubr.f32.mxu0 %v1220_v4 }
 0x16f   :  { %895 = vmatprep.mubr.f32.mxu1 %v1220_v4 }
 0x171   :  { %928 = vmatmul.mubr.msk.f32.gmra.mrb[10].mxu0 %vm587_vm0, %v34_v12 }
 0x172   :  { %930 = vmatmul.mubr.msk.f32.gmra.mrb[10].mxu1 %vm587_vm0, %v34_v12 }
 0x200   :  { %v660_v20 = vpop.f32.mrb[4].mxu0 }
 0x201   :  { %v737_v21 = vpop.f32.mrb[4].mxu1  ;;  %v661_v22 = vadd.f32 %v660_v20, %v580_v19  ;;  %v662_v23 = vpop.f32.mrb[5].mxu0 }
 0x202   :  { %v738_v24 = vadd.f32 %v737_v21, %v580_v19  ;;  %v663_v25 = vadd.f32 %v662_v23, %v580_v19  ;;  %v739_v26 = vpop.f32.mrb[5].mxu1 }
 0x203   :  { %902 = vst [vmem:[%s1349_s4] sm:$0xff] %v661_v22  ;;  %v740_v28 = vadd.f32 %v739_v26, %v580_v19 }
 0x204   :  { %904 = vst [vmem:[%s1349_s4 + $0x10] sm:$0xff] %v738_v24  ;;  %903 = vst [vmem:[%s1349_s4 + $0x8] sm:$0xff] %v663_v25  ;;  %v666_v29 = vpop.f32.mrb[6].mxu0 }
 0x205   :  { %905 = vst [vmem:[%s1349_s4 + $0x18] sm:$0xff] %v740_v28  ;;  %v743_v30 = vpop.f32.mrb[6].mxu1  ;;  %v667_v31 = vadd.f32 %v666_v29, %v585_v27  ;;  %v668_v32 = vpop.f32.mrb[7].mxu0 }
 0x206   :  { %v744_v33 = vadd.f32 %v743_v30, %v585_v27  ;;  %v669_v34 = vadd.f32 %v668_v32, %v585_v27  ;;  %v745_v35 = vpop.f32.mrb[7].mxu1 }
 0x207   :  { %910 = vst [vmem:[%s1349_s4 + $0x40] sm:$0xff] %v667_v31  ;;  %v746_v36 = vadd.f32 %v745_v35, %v585_v27 }
 0x208   :  { %912 = vst [vmem:[%s1349_s4 + $0x50] sm:$0xff] %v744_v33  ;;  %911 = vst [vmem:[%s1349_s4 + $0x48] sm:$0xff] %v669_v34 }
 0x209   :  { %913 = vst [vmem:[%s1349_s4 + $0x58] sm:$0xff] %v746_v36 }
 0x240   :  { %v814_v37 = vpop.f32.mrb[8].mxu0 }
 0x241   :  { %v815_v38 = vadd.f32 %v814_v37, %v580_v19  ;;  %v891_v39 = vpop.f32.mrb[8].mxu1  ;;  %v816_v40 = vpop.f32.mrb[9].mxu0 }
 0x242   :  { %v892_v41 = vadd.f32 %v891_v39, %v580_v19  ;;  %v817_v42 = vadd.f32 %v816_v40, %v580_v19  ;;  %v893_v43 = vpop.f32.mrb[9].mxu1 }
 0x243   :  { %906 = vst [vmem:[%s1349_s4 + $0x20] sm:$0xff] %v815_v38  ;;  %v894_v44 = vadd.f32 %v893_v43, %v580_v19 }
 0x244   :  { %908 = vst [vmem:[%s1349_s4 + $0x30] sm:$0xff] %v892_v41  ;;  %907 = vst [vmem:[%s1349_s4 + $0x28] sm:$0xff] %v817_v42  ;;  %v820_v45 = vpop.f32.mrb[10].mxu0 }
 0x245   :  { %909 = vst [vmem:[%s1349_s4 + $0x38] sm:$0xff] %v894_v44  ;;  %v821_v46 = vadd.f32 %v820_v45, %v585_v27  ;;  %v897_v47 = vpop.f32.mrb[10].mxu1  ;;  %v822_v48 = vpop.f32.mrb[11].mxu0 }
 0x246   :  { %v898_v49 = vadd.f32 %v897_v47, %v585_v27  ;;  %v823_v50 = vadd.f32 %v822_v48, %v585_v27  ;;  %v899_v51 = vpop.f32.mrb[11].mxu1 }
 0x247   :  { %914 = vst [vmem:[%s1349_s4 + $0x60] sm:$0xff] %v821_v46  ;;  %v900_v52 = vadd.f32 %v899_v51, %v585_v27 }
 0x248   :  { %916 = vst [vmem:[%s1349_s4 + $0x70] sm:$0xff] %v898_v49  ;;  %915 = vst [vmem:[%s1349_s4 + $0x68] sm:$0xff] %v823_v50 }
 0x249   :  { %917 = vst [vmem:[%s1349_s4 + $0x78] sm:$0xff] %v900_v52 }
 0x24a   :  { %922 = vsyncpa [#allocation3], 1 }

</bundles_post_ra>
